<compile_context>
chip_gen: v5e
topology: v5e:2x2
jax: 0.10.0
libtpu: 0.0.40
codegen_flags: <defaults>
</compile_context>

<pallas_src>
import jax
import jax.numpy as jnp
from jax.experimental import pallas as pl
from jax.experimental.pallas import tpu as pltpu


# -----------------------------------------------------------------------------
# Primary path: zero-data-movement identity via input/output buffer aliasing.
# -----------------------------------------------------------------------------
def _identity_alias_kernel(x_ref, o_ref):
    # The output HBM buffer IS the input HBM buffer (input_output_aliases),
    # so there is nothing to load, compute, or store.
    del x_ref, o_ref


def _identity_alias(x: jax.Array) -> jax.Array:
    return pl.pallas_call(
        _identity_alias_kernel,
        out_shape=jax.ShapeDtypeStruct(x.shape, x.dtype),
        in_specs=[pl.BlockSpec(memory_space=pl.ANY)],   # raw HBM ref, no auto-DMA
        out_specs=pl.BlockSpec(memory_space=pl.ANY),    # raw HBM ref, no auto-DMA
        input_output_aliases={0: 0},                    # output buffer == input buffer
    )(x)


# -----------------------------------------------------------------------------
# Fallback path: explicit lane-dense copy (used only if the aliasing path is
# unavailable on this jax/libtpu build).
# -----------------------------------------------------------------------------
_LANE = 128
_SUBLANE = 8
# 4096 rows x 128 lanes x 4 B = 2 MiB per f32 block: large enough to amortize
# the ~0.35 us per-grid-step overhead (~85% HBM roofline), small enough that
# double-buffered in + out buffers fit the default scoped VMEM on all gens
# (including v7x's smaller 64 MiB physical VMEM).
_MAX_BLOCK_ROWS = 4096


def _identity_copy_kernel(x_ref, o_ref):
    o_ref[...] = x_ref[...]


def _identity_copy(x: jax.Array) -> jax.Array:
    orig_shape = x.shape
    n = x.size
    if n == 0:
        return x

    if n % _LANE == 0 and (n // _LANE) % _SUBLANE == 0:
        # Lane-dense (rows, 128) view — a metadata-only reshape, no padding or
        # concatenation copies in the wrapper.
        rows = n // _LANE
        x2d = x.reshape(rows, _LANE)
        block_rows = min(rows, _MAX_BLOCK_ROWS)
        out = pl.pallas_call(
            _identity_copy_kernel,
            out_shape=jax.ShapeDtypeStruct((rows, _LANE), x.dtype),
            grid=(pl.cdiv(rows, block_rows),),
            in_specs=[pl.BlockSpec((block_rows, _LANE), lambda i: (i, 0))],
            out_specs=pl.BlockSpec((block_rows, _LANE), lambda i: (i, 0)),
            compiler_params=pltpu.CompilerParams(
                dimension_semantics=("parallel",)  # shards across TCs on v7x
            ),
        )(x2d)
        return out.reshape(orig_shape)

    # Ragged sizes: copy the whole array as one full-shape block (block_shape
    # equal to full array dims has no (8,128) divisibility requirement).
    return pl.pallas_call(
        _identity_copy_kernel,
        out_shape=jax.ShapeDtypeStruct(orig_shape, x.dtype),
    )(x)


def identity(x: jax.Array) -> jax.Array:
    """Identity forward pass: returns x unchanged."""
    try:
        return _identity_alias(x)
    except Exception:  # portability fallback only; alias path is the fast path
        return _identity_copy(x)


if __name__ == "__main__":
    key = jax.random.PRNGKey(0)
    shape, dtype = (2, 4, 16, 16), jnp.float32  # small NCHW input

    x = jax.random.normal(key, shape, dtype=dtype)
    # Regenerate the same deterministic values for the check so the test does
    # not depend on x's buffer remaining live after it is aliased to the output.
    expected = jax.random.normal(key, shape, dtype=dtype)

    y = identity(x)
    jax.block_until_ready(y)

    assert y.shape == shape and y.dtype == dtype
    assert bool(jnp.all(y == expected))
    print("KERNEL_OK")
</pallas_src>

<mosaic_0001>
module attributes {stable_mosaic.version = 11 : i64} {
  func.func @_identity_alias_kernel(%arg0: memref<2x4x16x16xf32, #tpu.memory_space<any>>, %arg1: memref<2x4x16x16xf32, #tpu.memory_space<any>>) attributes {dimension_semantics = [], scalar_prefetch = 0 : i64, scratch_operands = 0 : i64, tpu.core_type = #tpu.core_type<tc>} {
    return
  }
}

module attributes {stable_mosaic.version = 11 : i64} {
  func.func @_identity_copy_kernel(%arg0: i32, %arg1: memref<16x128xf32, #tpu.memory_space<vmem>>, %arg2: memref<16x128xf32, #tpu.memory_space<vmem>>) attributes {dimension_semantics = [#tpu.dimension_semantics<parallel>], iteration_bounds = array<i64: 1>, scalar_prefetch = 0 : i64, scratch_operands = 0 : i64, tpu.core_type = #tpu.core_type<tc>, window_params = [{transform_indices = @transform_0, window_bounds = array<i64: 16, 128>}, {transform_indices = @transform_1, window_bounds = array<i64: 16, 128>}]} {
    %c0 = arith.constant 0 : index
    %c0_0 = arith.constant 0 : index
    %0 = vector.load %arg1[%c0, %c0_0] : memref<16x128xf32, #tpu.memory_space<vmem>>, vector<16x128xf32>
    %c0_1 = arith.constant 0 : index
    %c0_2 = arith.constant 0 : index
    %1 = vector.load %arg2[%c0_1, %c0_2] : memref<16x128xf32, #tpu.memory_space<vmem>>, vector<16x128xf32>
    tpu.vector_store %arg2[%c0_1, %c0_2], %0 {strides = array<i32>} : memref<16x128xf32, #tpu.memory_space<vmem>>, vector<16x128xf32>,
    return
  }
  func.func @transform_0(%arg0: i32) -> (i32, i32) {
    %c0_i32 = arith.constant 0 : i32
    %c0_i32_0 = arith.constant 0 : i32
    return %arg0, %c0_i32 : i32, i32
  }
  func.func @transform_1(%arg0: i32) -> (i32, i32) {
    %c0_i32 = arith.constant 0 : i32
    %c0_i32_0 = arith.constant 0 : i32
    return %arg0, %c0_i32 : i32, i32
  }
}

</mosaic_0001>

<bundles_post_ra>
// kernel: tpu_custom_call.1
= control target key start
LH: loop header
LB: loop body
LE: loop exit
PB: predicated region body
PF: predicated region fallthrough
CT: control target
= control target key end

     0   :  { %s16_s0 = inlined_call_operand.hbm [shape: f32[2,4,16,16], index: 0, kind: input, shape index: {}, may-alias: {0,1}]   ;;  %s17_s1 = inlined_call_operand.hbm [shape: f32[2,4,16,16], index: 1, kind: output, shape index: {}, may-alias: {0,1}]  }

// kernel: tpu_custom_call.1
= control target key start
LH: loop header
LB: loop body
LE: loop exit
PB: predicated region body
PF: predicated region fallthrough
CT: control target
= control target key end

     0   :  { %6 = vsyncpa [#allocation3], 0  ;;  %s124_s0 = inlined_call_operand.hbm [shape: f32[16,128], index: 0, kind: input, shape index: {}]   ;;  %s125_s1 = inlined_call_operand.hbm [shape: f32[16,128], index: 1, kind: output, shape index: {}]  }
   0x1   :  { %7 = vsyncpa [#allocation4], 0  ;;  %s12_s8 = sshll.u32 %s124_s0, 4  ;;  %s104_s9 = smov [#allocation2]   ;;  %s13_s8 = int_to_ptr.hbm [resolvable:$true] %s12_s8 }
   0x2   :  { %s14_s10 = sshll.u32 %s104_s9, 4  ;;  %s105_s11 = smov 128   ;;  %s15_s10 = int_to_ptr.vmem [resolvable:$true] %s14_s10 }
   0x3   :  { %s106_s12 = smov 8  }
   0x4   :  { %20 = dma.hbm_to_vmem [thread:$0]  %s13_s8, 256, %s15_s10, [#allocation3], %s105_s11, %s105_s11, %s106_s12  }
   0x5   :  { %100 = dma.done.wait [#allocation3], 256  }
   0x6   :  { %101 = vsyncadd [#allocation3], 4294967040  ;;  %s107_s13 = smov [#allocation5]   ;;  %s35_s17 = sshll.u32 %s125_s1, 4  ;;  %v25_v0 = vld [vmem:[#allocation2] sm:$0xff]  ;;  %v26_v1 = vld [vmem:[#allocation2 + $0x8] sm:$0xff]  ;;  %s36_s17 = int_to_ptr.hbm [resolvable:$true] %s35_s17 }
   0x7   :  { %s33_s14 = sshll.u32 %s107_s13, 4  ;;  %27 = vst [vmem:[#allocation5] sm:$0xff] %v25_v0  ;;  %s34_s14 = int_to_ptr.vmem [resolvable:$true] %s33_s14 }
   0x8   :  { %28 = vst [vmem:[#allocation5 + $0x8] sm:$0xff] %v26_v1 }
   0x9   :  { %41 = dma.vmem_to_hbm [thread:$0]  %s34_s14, 256, %s36_s17, [#allocation4], %s105_s11, %s105_s11, %s106_s12  }
   0xa   :  { %102 = dma.done.wait [#allocation4], 256  }
   0xb   :  { %103 = vsyncadd [#allocation4], 4294967040 }
   0xc   :  { %46 = vsyncpa [#allocation3], 1 }
   0xd   :  { %47 = vsyncpa [#allocation4], 1 }

</bundles_post_ra>
